<compile_context>
chip_gen: v7x
topology: tpu7x:2x2x1
jax: 0.10.0
libtpu: 0.0.40
codegen_flags: <defaults>
</compile_context>

<pallas_src>
import jax
import jax.numpy as jnp
from jax.experimental import pallas as pl
from jax.experimental.pallas import tpu as pltpu


def _conv1x1_kernel(x_ref, w_ref, b_ref, o_ref):
    # x_ref: (C_in, tS) VMEM; w_ref: (C_out, C_in) SMEM; b_ref: (C_out,) SMEM;
    # o_ref: (C_out, tS) VMEM.
    c_in = x_ref.shape[0]
    c_out = o_ref.shape[0]
    # Load each input-channel strip once (lane-dense (1, tS) rows).
    rows = [x_ref[k:k + 1, :] for k in range(c_in)]
    for c in range(c_out):
        acc = rows[0] * w_ref[c, 0]
        for k in range(1, c_in):
            acc = acc + rows[k] * w_ref[c, k]
        o_ref[c:c + 1, :] = (acc + b_ref[c]).astype(o_ref.dtype)


def output_block_forward(x, weight, bias, *, ts_target=65536):
    """x: (N, C_in, D, H, W); weight: (C_out, C_in, 1, 1, 1); bias: (C_out,)."""
    N, C_in, D, H, W = x.shape
    C_out = weight.shape[0]
    S = D * H * W
    LANE = 128

    # Free reshapes (contiguous), no transposes.
    x3 = x.reshape(N, C_in, S)
    w2d = weight.reshape(C_out, C_in)
    b1d = bias.reshape(C_out)

    # Spatial tile: either the whole spatial extent (single tile per batch,
    # no lane-divisibility constraint) or a 128-aligned tile with padding.
    if S <= ts_target:
        tS, S_pad = S, S
    else:
        tS = max(LANE, (ts_target // LANE) * LANE)
        S_pad = pl.cdiv(S, tS) * tS
        if S_pad != S:
            x3 = jnp.pad(x3, ((0, 0), (0, 0), (0, S_pad - S)))

    grid = (N, S_pad // tS)

    y3 = pl.pallas_call(
        _conv1x1_kernel,
        out_shape=jax.ShapeDtypeStruct((N, C_out, S_pad), x.dtype),
        grid_spec=pltpu.PrefetchScalarGridSpec(
            num_scalar_prefetch=0,
            grid=grid,
            in_specs=[
                # Squeeze the batch dim; kernel sees (C_in, tS).
                pl.BlockSpec((None, C_in, tS), lambda n, s: (n, 0, s)),
                # Tiny weight / bias live in SMEM (scalar reads in-kernel).
                pl.BlockSpec(memory_space=pltpu.MemorySpace.SMEM),
                pl.BlockSpec(memory_space=pltpu.MemorySpace.SMEM),
            ],
            out_specs=pl.BlockSpec((None, C_out, tS), lambda n, s: (n, 0, s)),
        ),
        compiler_params=pltpu.CompilerParams(
            dimension_semantics=("parallel", "parallel")),
    )(x3, w2d, b1d)

    if S_pad != S:
        y3 = y3[:, :, :S]
    return y3.reshape(N, C_out, D, H, W)


if __name__ == "__main__":
    key = jax.random.PRNGKey(0)
    k_x, k_w, k_b = jax.random.split(key, 3)

    # Small shapes consistent with a 3D segmentation output head.
    N, C_in, C_out, D, H, W = 2, 4, 3, 8, 8, 8

    x = jax.random.normal(k_x, (N, C_in, D, H, W), dtype=jnp.float32)
    # Deterministic parameter init (synthetic; mimics Conv3d kaiming-uniform scale).
    bound = 1.0 / (C_in ** 0.5)
    weight = jax.random.uniform(k_w, (C_out, C_in, 1, 1, 1),
                                minval=-bound, maxval=bound, dtype=jnp.float32)
    bias = jax.random.uniform(k_b, (C_out,),
                              minval=-bound, maxval=bound, dtype=jnp.float32)

    y = output_block_forward(x, weight, bias)
    y = jax.block_until_ready(y)

    # Reference check (plain JAX einsum = 1x1x1 conv).
    y_ref = jnp.einsum("ncdhw,oc->nodhw", x, weight.reshape(C_out, C_in)) \
            + bias.reshape(1, C_out, 1, 1, 1)
    assert y.shape == (N, C_out, D, H, W)
    assert jnp.allclose(y, y_ref, atol=1e-5, rtol=1e-5)

    print("KERNEL_OK")
</pallas_src>

<mosaic_0001>
module attributes {stable_mosaic.version = 11 : i64} {
  func.func @_conv1x1_kernel(%arg0: i32, %arg1: i32, %arg2: memref<1x4x512xf32, #tpu.memory_space<vmem>>, %arg3: memref<3x4xf32, #tpu.memory_space<smem>>, %arg4: memref<3xf32, #tpu.memory_space<smem>>, %arg5: memref<1x3x512xf32, #tpu.memory_space<vmem>>) attributes {dimension_semantics = [#tpu.dimension_semantics<parallel>, #tpu.dimension_semantics<parallel>], iteration_bounds = array<i64: 2, 1>, scalar_prefetch = 0 : i64, scratch_operands = 0 : i64, tpu.core_type = #tpu.core_type<tc>, window_params = [{transform_indices = @transform_0, window_bounds = array<i64: 1, 4, 512>}, {transform_indices = @transform_1, window_bounds = array<i64: 3, 4>}, {transform_indices = @transform_2, window_bounds = array<i64: 3>}, {transform_indices = @transform_3, window_bounds = array<i64: 1, 3, 512>}]} {
    %c0 = arith.constant 0 : index
    %c0_0 = arith.constant 0 : index
    %c0_1 = arith.constant 0 : index
    %0 = vector.load %arg2[%c0, %c0_0, %c0_1] : memref<1x4x512xf32, #tpu.memory_space<vmem>>, vector<1x1x512xf32>
    %1 = vector.shape_cast %0 : vector<1x1x512xf32> to vector<1x512xf32>
    %c0_2 = arith.constant 0 : index
    %c1 = arith.constant 1 : index
    %c0_3 = arith.constant 0 : index
    %2 = vector.load %arg2[%c0_2, %c1, %c0_3] : memref<1x4x512xf32, #tpu.memory_space<vmem>>, vector<1x1x512xf32>
    %3 = vector.shape_cast %2 : vector<1x1x512xf32> to vector<1x512xf32>
    %c0_4 = arith.constant 0 : index
    %c2 = arith.constant 2 : index
    %c0_5 = arith.constant 0 : index
    %4 = vector.load %arg2[%c0_4, %c2, %c0_5] : memref<1x4x512xf32, #tpu.memory_space<vmem>>, vector<1x1x512xf32>
    %5 = vector.shape_cast %4 : vector<1x1x512xf32> to vector<1x512xf32>
    %c0_6 = arith.constant 0 : index
    %c3 = arith.constant 3 : index
    %c0_7 = arith.constant 0 : index
    %6 = vector.load %arg2[%c0_6, %c3, %c0_7] : memref<1x4x512xf32, #tpu.memory_space<vmem>>, vector<1x1x512xf32>
    %7 = vector.shape_cast %6 : vector<1x1x512xf32> to vector<1x512xf32>
    %c0_8 = arith.constant 0 : index
    %c0_9 = arith.constant 0 : index
    %8 = memref.load %arg3[%c0_8, %c0_9] : memref<3x4xf32, #tpu.memory_space<smem>>
    %9 = vector.broadcast %8 : f32 to vector<1x512xf32>
    %10 = arith.mulf %1, %9 : vector<1x512xf32>
    %c0_10 = arith.constant 0 : index
    %c1_11 = arith.constant 1 : index
    %11 = memref.load %arg3[%c0_10, %c1_11] : memref<3x4xf32, #tpu.memory_space<smem>>
    %12 = vector.broadcast %11 : f32 to vector<1x512xf32>
    %13 = arith.mulf %3, %12 : vector<1x512xf32>
    %14 = arith.addf %10, %13 : vector<1x512xf32>
    %c0_12 = arith.constant 0 : index
    %c2_13 = arith.constant 2 : index
    %15 = memref.load %arg3[%c0_12, %c2_13] : memref<3x4xf32, #tpu.memory_space<smem>>
    %16 = vector.broadcast %15 : f32 to vector<1x512xf32>
    %17 = arith.mulf %5, %16 : vector<1x512xf32>
    %18 = arith.addf %14, %17 : vector<1x512xf32>
    %c0_14 = arith.constant 0 : index
    %c3_15 = arith.constant 3 : index
    %19 = memref.load %arg3[%c0_14, %c3_15] : memref<3x4xf32, #tpu.memory_space<smem>>
    %20 = vector.broadcast %19 : f32 to vector<1x512xf32>
    %21 = arith.mulf %7, %20 : vector<1x512xf32>
    %22 = arith.addf %18, %21 : vector<1x512xf32>
    %c0_16 = arith.constant 0 : index
    %23 = memref.load %arg4[%c0_16] : memref<3xf32, #tpu.memory_space<smem>>
    %24 = vector.broadcast %23 : f32 to vector<1x512xf32>
    %25 = arith.addf %22, %24 : vector<1x512xf32>
    %c0_17 = arith.constant 0 : index
    %c0_18 = arith.constant 0 : index
    %c0_19 = arith.constant 0 : index
    %26 = vector.load %arg5[%c0_17, %c0_18, %c0_19] : memref<1x3x512xf32, #tpu.memory_space<vmem>>, vector<1x1x512xf32>
    %27 = vector.shape_cast %26 : vector<1x1x512xf32> to vector<1x512xf32>
    %28 = vector.shape_cast %25 : vector<1x512xf32> to vector<1x1x512xf32>
    tpu.vector_store %arg5[%c0_17, %c0_18, %c0_19], %28 {strides = array<i32>} : memref<1x3x512xf32, #tpu.memory_space<vmem>>, vector<1x1x512xf32>,
    %c1_20 = arith.constant 1 : index
    %c0_21 = arith.constant 0 : index
    %29 = memref.load %arg3[%c1_20, %c0_21] : memref<3x4xf32, #tpu.memory_space<smem>>
    %30 = vector.broadcast %29 : f32 to vector<1x512xf32>
    %31 = arith.mulf %1, %30 : vector<1x512xf32>
    %c1_22 = arith.constant 1 : index
    %c1_23 = arith.constant 1 : index
    %32 = memref.load %arg3[%c1_22, %c1_23] : memref<3x4xf32, #tpu.memory_space<smem>>
    %33 = vector.broadcast %32 : f32 to vector<1x512xf32>
    %34 = arith.mulf %3, %33 : vector<1x512xf32>
    %35 = arith.addf %31, %34 : vector<1x512xf32>
    %c1_24 = arith.constant 1 : index
    %c2_25 = arith.constant 2 : index
    %36 = memref.load %arg3[%c1_24, %c2_25] : memref<3x4xf32, #tpu.memory_space<smem>>
    %37 = vector.broadcast %36 : f32 to vector<1x512xf32>
    %38 = arith.mulf %5, %37 : vector<1x512xf32>
    %39 = arith.addf %35, %38 : vector<1x512xf32>
    %c1_26 = arith.constant 1 : index
    %c3_27 = arith.constant 3 : index
    %40 = memref.load %arg3[%c1_26, %c3_27] : memref<3x4xf32, #tpu.memory_space<smem>>
    %41 = vector.broadcast %40 : f32 to vector<1x512xf32>
    %42 = arith.mulf %7, %41 : vector<1x512xf32>
    %43 = arith.addf %39, %42 : vector<1x512xf32>
    %c1_28 = arith.constant 1 : index
    %44 = memref.load %arg4[%c1_28] : memref<3xf32, #tpu.memory_space<smem>>
    %45 = vector.broadcast %44 : f32 to vector<1x512xf32>
    %46 = arith.addf %43, %45 : vector<1x512xf32>
    %c0_29 = arith.constant 0 : index
    %c1_30 = arith.constant 1 : index
    %c0_31 = arith.constant 0 : index
    %47 = vector.load %arg5[%c0_29, %c1_30, %c0_31] : memref<1x3x512xf32, #tpu.memory_space<vmem>>, vector<1x1x512xf32>
    %48 = vector.shape_cast %47 : vector<1x1x512xf32> to vector<1x512xf32>
    %49 = vector.shape_cast %46 : vector<1x512xf32> to vector<1x1x512xf32>
    tpu.vector_store %arg5[%c0_29, %c1_30, %c0_31], %49 {strides = array<i32>} : memref<1x3x512xf32, #tpu.memory_space<vmem>>, vector<1x1x512xf32>,
    %c2_32 = arith.constant 2 : index
    %c0_33 = arith.constant 0 : index
    %50 = memref.load %arg3[%c2_32, %c0_33] : memref<3x4xf32, #tpu.memory_space<smem>>
    %51 = vector.broadcast %50 : f32 to vector<1x512xf32>
    %52 = arith.mulf %1, %51 : vector<1x512xf32>
    %c2_34 = arith.constant 2 : index
    %c1_35 = arith.constant 1 : index
    %53 = memref.load %arg3[%c2_34, %c1_35] : memref<3x4xf32, #tpu.memory_space<smem>>
    %54 = vector.broadcast %53 : f32 to vector<1x512xf32>
    %55 = arith.mulf %3, %54 : vector<1x512xf32>
    %56 = arith.addf %52, %55 : vector<1x512xf32>
    %c2_36 = arith.constant 2 : index
    %c2_37 = arith.constant 2 : index
    %57 = memref.load %arg3[%c2_36, %c2_37] : memref<3x4xf32, #tpu.memory_space<smem>>
    %58 = vector.broadcast %57 : f32 to vector<1x512xf32>
    %59 = arith.mulf %5, %58 : vector<1x512xf32>
    %60 = arith.addf %56, %59 : vector<1x512xf32>
    %c2_38 = arith.constant 2 : index
    %c3_39 = arith.constant 3 : index
    %61 = memref.load %arg3[%c2_38, %c3_39] : memref<3x4xf32, #tpu.memory_space<smem>>
    %62 = vector.broadcast %61 : f32 to vector<1x512xf32>
    %63 = arith.mulf %7, %62 : vector<1x512xf32>
    %64 = arith.addf %60, %63 : vector<1x512xf32>
    %c2_40 = arith.constant 2 : index
    %65 = memref.load %arg4[%c2_40] : memref<3xf32, #tpu.memory_space<smem>>
    %66 = vector.broadcast %65 : f32 to vector<1x512xf32>
    %67 = arith.addf %64, %66 : vector<1x512xf32>
    %c0_41 = arith.constant 0 : index
    %c2_42 = arith.constant 2 : index
    %c0_43 = arith.constant 0 : index
    %68 = vector.load %arg5[%c0_41, %c2_42, %c0_43] : memref<1x3x512xf32, #tpu.memory_space<vmem>>, vector<1x1x512xf32>
    %69 = vector.shape_cast %68 : vector<1x1x512xf32> to vector<1x512xf32>
    %70 = vector.shape_cast %67 : vector<1x512xf32> to vector<1x1x512xf32>
    tpu.vector_store %arg5[%c0_41, %c2_42, %c0_43], %70 {strides = array<i32>} : memref<1x3x512xf32, #tpu.memory_space<vmem>>, vector<1x1x512xf32>,
    return
  }
  func.func @transform_0(%arg0: i32, %arg1: i32) -> (i32, i32, i32) {
    %c0_i32 = arith.constant 0 : i32
    %c0_i32_0 = arith.constant 0 : i32
    return %arg0, %c0_i32, %arg1 : i32, i32, i32
  }
  func.func @transform_1(%arg0: i32, %arg1: i32) -> (i32, i32) {
    %c0_i32 = arith.constant 0 : i32
    %c0_i32_0 = arith.constant 0 : i32
    %c0_i32_1 = arith.constant 0 : i32
    return %c0_i32, %c0_i32_0 : i32, i32
  }
  func.func @transform_2(%arg0: i32, %arg1: i32) -> i32 {
    %c0_i32 = arith.constant 0 : i32
    %c0_i32_0 = arith.constant 0 : i32
    return %c0_i32 : i32
  }
  func.func @transform_3(%arg0: i32, %arg1: i32) -> (i32, i32, i32) {
    %c0_i32 = arith.constant 0 : i32
    %c0_i32_0 = arith.constant 0 : i32
    return %arg0, %c0_i32, %arg1 : i32, i32, i32
  }
}

</mosaic_0001>

<bundles_post_ra>
// kernel: tpu_custom_call.1
= control target key start
LH: loop header
LB: loop body
LE: loop exit
PB: predicated region body
PF: predicated region fallthrough
CT: control target
= control target key end

     0   :  { %8 = vsyncpa [#allocation3], 0  ;;  %s867_s0 = inlined_call_operand.hbm [shape: f32[2,4,512], index: 0, kind: input, shape index: {}]   ;;  %s868_s1 = inlined_call_operand.hbm [shape: f32[3,4], index: 1, kind: input, shape index: {}]   ;;  %s869_s2 = inlined_call_operand.vmem [shape: f32[3], index: 2, kind: input, shape index: {}]   ;;  %s870_s3 = inlined_call_operand.vmem [shape: f32[2,3,512], index: 3, kind: output, shape index: {}]  }
   0x1   :  { %10 = vsyncpa [#allocation3 + $0x1], 0 }
   0x2   :  { %11 = vsyncpa [#allocation4], 0 }
   0x3   :  { %12 = vsyncpa [#allocation5], 0  ;;  %s685_s12 = smov 0   ;;  %s687_s13 = smov 0  }
   0x4   :  { %s689_s14 = smov 0   ;;  %s691_s15 = smov 0  }
   0x5   :  { %s693_s16 = smov 0   ;;  %s695_s17 = smov 0  }
   0x6 LB: > { %s431_s18 = sadd.s32 4294967295, %s660_s17   ;;  %p52_p0 = scmp.ne.s32.totalorder %s644_s13, %s640_s12  ;;  %s660_s17 = sphi %s695_s17, %s18_s17   ;;  %s656_s16 = sphi %s693_s16, %s886_s16   ;;  %s652_s15 = sphi %s691_s15, %s885_s15   ;;  %s648_s14 = sphi %s689_s14, %s884_s14   ;;  %s644_s13 = sphi %s687_s13, %s883_s13   ;;  %s640_s12 = sphi %s685_s12, %s882_s12  }
   0x7   : > { %p715_p1 = scmp.eq.s32.totalorder %s431_s18, 0  ;;  %p433_p2 = scmp.ge.s32.totalorder %s660_s17, 1 }
   0x8   : > { %p133_p3 = scmp.lt.s32.totalorder %s660_s17, 3  ;;  %s155_s24 = sshll.u32 %s869_s2, 4  ;;  %s156_s24 = int_to_ptr.vmem [resolvable:$true] %s155_s24 }
   0x9   : > { %s874_s19 = scalar_select %p715_p1, 1, 0 }
   0xa   : > { %p723_p4 = por %p715_p1, %p52_p0  ;;  %p727_p5 = pnand %p433_p2, %p133_p3 }
   0xb   : > { %s30_s26 = sadd.s32 1, %s656_s16  ;;  %s544_s30 = scalar_lea.hbm %s868_s1, 64 }
   0xc   : > { %s875_s20 = scalar_select %p723_p4, 1, 0 }
   0xd   : > { %p478_p6 = pneg %p727_p5  ;;  %p743_p8 = scmp.ge.s32.totalorder %s30_s26, 2 }
   0xe   : > { %p545_p9 = scmp.ne.s32.totalorder %s868_s1, %s544_s30  ;;  %p551_p13 = scmp.lt.u32.totalorder %s544_s30, %s868_s1 }
   0xf   : > { %p738_p7 = pnand %p478_p6, %p715_p1 }
  0x11   : > { %p546_p10 = pneg %p738_p7 }
  0x13   : > { %p547_p11 = pnand %p546_p10, %p545_p9 }
  0x15   : > { %p548_p12 = pneg %p547_p11 }
  0x17   : > { %p553_p0 = pnand %p551_p13, %p548_p12 }
  0x19   : > { %556 = shalt.err (!%p553_p0)
}
  0x1a   : > { %s662_s8 = smov [#allocation6]   ;;  %s557_s11 = scalar_lea.vmem %s156_s24, 16 }
  0x1b   : > { %481 = dma.hbm_to_smem (!%p738_p7), %s868_s1, 64, %s662_s8, [#allocation4]  }
  0x1c   : > { %p558_p2 = scmp.ne.s32.totalorder %s156_s24, %s557_s11  ;;  %p565_p1 = scmp.lt.s32.totalorder %s156_s24, %s156_s24 }
  0x1d   : > { %p566_p9 = scmp.lt.s32.totalorder %s557_s11, %s557_s11 }
  0x1e   : > { %p560_p3 = pnand %p558_p2, %p546_p10 }
  0x1f   : > { %p567_p11 = por %p566_p9, %p565_p1 }
  0x20   : > { %p561_p6 = pneg %p560_p3 }
  0x22   : > { %p568_p4 = pnand %p567_p11, %p561_p6 }
  0x24   : > { %571 = shalt.err (!%p568_p4)
}
  0x25   : > { %s663_s12 = smov [#allocation7]   ;;  %s888_s26 = smov (%p743_p8, %s30_s26), 0 }
  0x26   : > { %484 = dma.vmem_to_smem (!%p738_p7), %s156_s24, 16, %s663_s12, [#allocation5]  }
  0x27   : > { %s39_s18 = sadd.s32 1, %s648_s14  ;;  %p46_p1 = scmp.ne.s32.totalorder %s648_s14, %s644_s13 }
  0x28   : > { %s34_s22 = ssub.s32 %s656_s16, %s888_s26  ;;  %p47_p4 = scmp.eq.s32.totalorder %s660_s17, 0 }
  0x29   : > { %p37_p10 = scmp.eq.s32.totalorder %s34_s22, 0  ;;  %p491_p12 = scmp.lt.s32.totalorder %s660_s17, 2 }
  0x2a   : > { %p48_p13 = por %p47_p4, %p46_p1  ;;  %s166_s23 = sand.u32 1, %s648_s14  }
  0x2b   : > { %s778_s25 = scalar_select %p37_p10, %s648_s14, %s39_s18  }
  0x2c   : > { %s437_s28 = sshll.u32 %s166_s23, 4  ;;  %s466_s29 = sshll.u32 %s656_s16, 8 }
  0x2d   : > { %s784_s24 = scalar_lea.hbm %s867_s0, %s466_s29  ;;  %s170_s27 = scalar_lea.vmem [#allocation2], %s437_s28 }
  0x2e   : > { %s180_s5 = sshll.u32 %s170_s27, 4  ;;  %p788_p7 = pnand %p491_p12, %p48_p13  ;;  %s786_s5 = int_to_ptr.vmem [resolvable:$true] %s180_s5 }
  0x2f   : > { %s167_s7 = scalar_lea.sflag [#allocation3], %s166_s23  ;;  %s572_s8 = scalar_lea.hbm %s784_s24, 256 }
  0x30   : > { %p573_p8 = scmp.ne.s32.totalorder %s784_s24, %s572_s8  ;;  %p574_p0 = pneg %p788_p7 }
  0x31   : > { %s577_s11 = scalar_lea.hbm %s867_s0, 512  ;;  %p578_p6 = scmp.lt.u32.totalorder %s784_s24, %s867_s0 }
  0x32   : > { %p575_p2 = pnand %p574_p0, %p573_p8  ;;  %p579_p9 = scmp.lt.u32.totalorder %s577_s11, %s572_s8 }
  0x33   : > { %p581_p1 = scmp.lt.u32.totalorder %s572_s8, %s784_s24 }
  0x34   : > { %p576_p3 = pneg %p575_p2  ;;  %p580_p11 = por %p579_p9, %p578_p6 }
  0x36   : > { %p582_p4 = por %p581_p1, %p580_p11 }
  0x38   : > { %p583_p10 = pnand %p582_p4, %p576_p3 }
  0x3a   : > { %586 = shalt.err (!%p583_p10)
}
  0x3b   : > { %s587_s22 = scalar_lea.vmem %s786_s5, 256  ;;  %s664_s23 = smov [#allocation2]  }
  0x3c   : > { %p588_p12 = scmp.ne.s32.totalorder %s786_s5, %s587_s22  ;;  %s592_s28 = sshll.u32 %s664_s23, 4  ;;  %s593_s28 = int_to_ptr.vmem [resolvable:$false] %s592_s28 }
  0x3d   : > { %s594_s29 = scalar_lea.vmem %s593_s28, 512  ;;  %p595_p2 = scmp.lt.s32.totalorder %s786_s5, %s593_s28 }
  0x3e   : > { %p590_p13 = pnand %p588_p12, %p574_p0  ;;  %p596_p6 = scmp.lt.s32.totalorder %s594_s29, %s587_s22 }
  0x40   : > { %p591_p8 = pneg %p590_p13  ;;  %p597_p9 = por %p596_p6, %p595_p2 }
  0x42   : > { %p598_p11 = pnand %p597_p9, %p591_p8 }
  0x44   : > { %601 = shalt.err (!%p598_p11)
}
  0x45   : > { %488 = dma.hbm_to_vmem [thread:$0]  (!%p788_p7), %s784_s24, 256, %s786_s5, %s167_s7  }
  0x46   : > { %189 = sbr.rel (%p727_p5) target bundleno = 109 (0x6d), region = 32  ;;  %s191_s30 = sand.u32 (!%p727_p5), 1, %s644_s13  }
  0x47   : > { %s441_s4 = sshll.u32 (!%p727_p5), %s191_s30, 4  ;;  %s192_s27 = scalar_lea.sflag (!%p727_p5), [#allocation3], %s191_s30 }
  0x48   : > { %s195_s8 = scalar_lea.vmem (!%p727_p5), [#allocation2], %s441_s4  ;;  %p880_p0 = scmp.ne.s32.totalorder (!%p727_p5), %s875_s20, 0 }
  0x4d   : > { %627 = dma.done.wait (%p880_p0), %s192_s27, 256  }
  0x4e   : > { %629 = vsyncadd (%p880_p0), %s192_s27, 4294967040  ;;  %p881_p3 = scmp.ne.s32.totalorder %s874_s19, 0 }
  0x50   : > { %631 = dma.done.wait (%p881_p3), [#allocation4], 64  }
  0x51   : > { %633 = vsyncadd (%p881_p3), [#allocation4], 4294967232 }
  0x52   : > { %635 = dma.done.wait (%p881_p3), [#allocation5], 16  }
  0x53   : > { %637 = vsyncadd (%p881_p3), [#allocation5], 4294967280 }
  0x54   : > { %208 = sfence }
  0x55   : > { %p233_p5 = scmp.lt.s32.totalorder %s652_s15, 1  ;;  %s249_s21 = sld [smem:[#allocation6]]  ;;  %v242_v0 = vld [vmem:[%s195_s8] ss:$4 sm:$0xf]  ;;  %v267_v11 = vlaneseq }
  0x56   : > { %s449_s20 = sld [smem:[#allocation6 + $0x1]]  ;;  %s450_s24 = sld [smem:[#allocation6 + $0x2]]  ;;  %v446_v1 = vld [vmem:[%s195_s8 + $0x1] ss:$4 sm:$0xf] }
  0x57   : > { %s890_s15 = smov (!%p233_p5, %s652_s15), 1  ;;  %s451_s5 = sld [smem:[#allocation6 + $0x3]]  ;;  %v447_v2 = vld [vmem:[%s195_s8 + $0x2] ss:$4 sm:$0xf]  ;;  %vm269_vm0 = vcmp.lt.s32.totalorder %v267_v11, 512 }
  0x58   : > { %s836_s6 = sld [smem:[#allocation7]]  ;;  %s453_s9 = sld [smem:[#allocation6 + $0x81]]  ;;  %v448_v4 = vld [vmem:[%s195_s8 + $0x3] ss:$4 sm:$0xf] }
  0x59   : > { %s452_s7 = sld [smem:[#allocation6 + $0x80]]  ;;  %s454_s19 = sld [smem:[#allocation6 + $0x82]] }
  0x5a   : > { %s455_s10 = sld [smem:[#allocation6 + $0x83]]  ;;  %s458_s11 = sld [smem:[#allocation6 + $0x100]] }
  0x5b   : > { %v250_v3 = vstv %s249_s21  ;;  %s459_s12 = sld [smem:[#allocation6 + $0x101]]  ;;  %s460_s18 = sld [smem:[#allocation6 + $0x102]] }
  0x5c   : > { %v251_v5 = vmul.f32 %v250_v3, %v242_v0  ;;  %v253_v6 = vstv %s449_s20  ;;  %v257_v7 = vstv %s450_s24  ;;  %s838_s22 = sld [smem:[#allocation7 + $0x1]]  ;;  %s840_s23 = sld [smem:[#allocation6 + $0x103]] }
  0x5d   : > { %v254_v8 = vmul.f32 %v446_v1, %v253_v6  ;;  %v258_v9 = vmul.f32 %v447_v2, %v257_v7  ;;  %v261_v10 = vstv %s451_s5  ;;  %s462_s28 = sld [smem:[#allocation7 + $0x2]]  ;;  %s467_s29 = sshll.u32 %s890_s15, 4 }
  0x5e   : > { %v262_v13 = vmul.f32 %v448_v4, %v261_v10  ;;  %v276_v15 = vstv %s453_s9  ;;  %v265_v21 = vstv %s836_s6  ;;  %s240_s27 = scalar_lea.vmem %s870_s3, %s467_s29 }
  0x5f   : > { %v255_v12 = vadd.f32 %v254_v8, %v251_v5  ;;  %v273_v14 = vstv %s452_s7  ;;  %v277_v17 = vmul.f32 %v446_v1, %v276_v15  ;;  %v280_v18 = vstv %s454_s19 }
  0x60   : > { %v274_v16 = vmul.f32 %v273_v14, %v242_v0  ;;  %v284_v19 = vstv %s455_s10  ;;  %v281_v22 = vmul.f32 %v447_v2, %v280_v18  ;;  %v293_v25 = vstv %s458_s11 }
  0x61   : > { %v259_v20 = vadd.f32 %v258_v9, %v255_v12  ;;  %v285_v23 = vmul.f32 %v448_v4, %v284_v19  ;;  %v296_v26 = vstv %s459_s12  ;;  %v300_v27 = vstv %s460_s18 }
  0x62   : > { %v278_v24 = vadd.f32 %v277_v17, %v274_v16  ;;  %v294_v29 = vmul.f32 %v293_v25, %v242_v0  ;;  %v297_v30 = vmul.f32 %v446_v1, %v296_v26  ;;  %v301_v31 = vmul.f32 %v447_v2, %v300_v27 }
  0x63   : > { %v263_v28 = vadd.f32 %v262_v13, %v259_v20  ;;  %v304_v33 = vstv %s840_s23  ;;  %v288_v35 = vstv %s838_s22  ;;  %v308_v41 = vstv %s462_s28 }
  0x64   : > { %v282_v32 = vadd.f32 %v281_v22, %v278_v24  ;;  %v298_v36 = vadd.f32 %v297_v30, %v294_v29  ;;  %v305_v37 = vmul.f32 %v448_v4, %v304_v33 }
  0x65   : > { %v266_v34 = vadd.f32 %v265_v21, %v263_v28 }
  0x66   : > { %v286_v38 = vadd.f32 %v285_v23, %v282_v32  ;;  %v302_v39 = vadd.f32 %v301_v31, %v298_v36 }
  0x67   : > { %271 = vst.msk [vmem:[%s240_s27] ss:$4 sm:$0xf] %vm269_vm0, %v266_v34 }
  0x68   : > { %v289_v40 = vadd.f32 %v288_v35, %v286_v38  ;;  %v306_v42 = vadd.f32 %v305_v37, %v302_v39 }
  0x6a   : > { %457 = vst.msk [vmem:[%s240_s27 + $0x1] ss:$4 sm:$0xf] %vm269_vm0, %v289_v40  ;;  %v309_v43 = vadd.f32 %v308_v41, %v306_v42 }
  0x6c   : > { %463 = vst.msk [vmem:[%s240_s27 + $0x2] ss:$4 sm:$0xf] %vm269_vm0, %v309_v43 }
  0x6d PF: > { %s18_s17 = sadd.s32 1, %s660_s17   ;;  %s882_s12 = smov %s644_s13 }
  0x6e   : > { %p15_p7 = scmp.ge.s32.totalorder %s18_s17, 4   ;;  %s883_s13 = smov %s648_s14 }
  0x6f   : > { %s884_s14 = smov %s778_s25  ;;  %s885_s15 = smov %s656_s16 }
  0x70   : > { %s886_s16 = smov %s888_s26  ;;  %17 = sbr.rel (!%p15_p7) target bundleno = 6 (0x6), region = 87 }
  0x77   :  { %342 = vsyncpa [#allocation3], 1 }
  0x78   :  { %344 = vsyncpa [#allocation3 + $0x1], 1 }
  0x79   :  { %345 = vsyncpa [#allocation4], 1 }
  0x7a   :  { %347 = vsyncpa [#allocation4 + $0x1], 1 }
  0x7b   :  { %348 = vsyncpa [#allocation5], 1 }
  0x7c   :  { %350 = vsyncpa [#allocation5 + $0x1], 1 }

</bundles_post_ra>
